<compile_context>
chip_gen: v5e
topology: v5e:2x2
jax: 0.10.0
libtpu: 0.0.40
codegen_flags: <defaults>
</compile_context>

<pallas_src>
import jax
import jax.numpy as jnp
import numpy as np
from jax.experimental import pallas as pl
from jax.experimental.pallas import tpu as pltpu


# ---------------------------------------------------------------------------
# align_corners=True linear-interp coefficients / matrices (host-side, numpy)
# ---------------------------------------------------------------------------
def _interp_coeffs(din, dout):
    """out[e] = (1 - fr[e]) * in[lo[e]] + fr[e] * in[hi[e]]   (align_corners=True)."""
    if din == 1:
        z = np.zeros(dout, np.int32)
        return z, z.copy(), np.zeros(dout, np.float32)
    src = np.arange(dout, dtype=np.float64) * (din - 1) / (dout - 1)
    lo = np.clip(np.floor(src).astype(np.int64), 0, din - 2)
    fr = (src - lo).astype(np.float32)
    return lo.astype(np.int32), (lo + 1).astype(np.int32), fr


def _interp_matrix(din, dout):
    """Dense (dout, din) align_corners=True interpolation matrix (numpy, f32)."""
    lo, hi, fr = _interp_coeffs(din, dout)
    m = np.zeros((dout, din), np.float32)
    m[np.arange(dout), lo] += (1.0 - fr)
    m[np.arange(dout), hi] += fr
    return m


def _pick_do_tile(do):
    """Output-depth tile: multiple of 8 (sublane rule) or the full extent."""
    if do % 8 != 0:
        return do
    for td in (32, 24, 16, 8):
        if do % td == 0:
            return td
    return do


# ---------------------------------------------------------------------------
# Fused kernels
# ---------------------------------------------------------------------------
def _fused_skip_kernel(lo_ref, hi_ref, fr_ref,
                       x_ref, skip_ref, w_ref, ws_ref, b_ref, mhw_ref, o_ref):
    # x_ref:    (1, D, Cin, H*W)        whole input depth, resident across the tile axis
    # skip_ref: (1, Cskip, td, Ho*Wo)   current output-depth tile of skipx (NCDHW layout)
    # w_ref:    (Cout, Cin)   = W2y @ W1   (conv2-y folded into conv1)
    # ws_ref:   (Cout, Cskip) = W2s
    # b_ref:    (Cout, 1)     = W2y @ b1 + b2
    # mhw_ref:  (H*W, Ho*Wo)  = (Mh (x) Mw)^T   separable in-plane upsample
    # o_ref:    (1, Cout, td, Ho*Wo)
    j = pl.program_id(1)
    td = o_ref.shape[2]
    w = w_ref[...]
    ws = ws_ref[...]
    b = b_ref[...]
    mhw = mhw_ref[...]
    for i in range(td):                                  # static unroll over the depth tile
        e = j * td + i                                   # global output-depth index
        lo = lo_ref[e]
        hi = hi_ref[e]
        f = fr_ref[e]
        xa = x_ref[0, lo]                                # (Cin, H*W)
        xb = x_ref[0, hi]
        xm = xa + f * (xb - xa)                          # D-interp on the VPU
        t = jnp.dot(w, xm, preferred_element_type=jnp.float32)     # (Cout, H*W)
        up = jnp.dot(t, mhw, preferred_element_type=jnp.float32)   # (Cout, Ho*Wo)
        sk = skip_ref[0, :, i, :]                        # (Cskip, Ho*Wo)
        o_ref[0, :, i, :] = (
            up + jnp.dot(ws, sk, preferred_element_type=jnp.float32) + b
        )


def _fused_noskip_kernel(lo_ref, hi_ref, fr_ref, x_ref, w_ref, b_ref, mhw_ref, o_ref):
    j = pl.program_id(1)
    td = o_ref.shape[2]
    w = w_ref[...]
    b = b_ref[...]
    mhw = mhw_ref[...]
    for i in range(td):
        e = j * td + i
        lo = lo_ref[e]
        hi = hi_ref[e]
        f = fr_ref[e]
        xa = x_ref[0, lo]
        xb = x_ref[0, hi]
        xm = xa + f * (xb - xa)
        t = jnp.dot(w, xm, preferred_element_type=jnp.float32)
        o_ref[0, :, i, :] = jnp.dot(t, mhw, preferred_element_type=jnp.float32) + b


# ---------------------------------------------------------------------------
# LinearUpSampling.forward
# ---------------------------------------------------------------------------
def linear_upsampling_forward(x, skipx, params, scale_factor=2):
    # x: (N, Cin, D, H, W) float32, NCDHW just like PyTorch.
    N, Cin, D, H, W = map(int, x.shape)
    w1, b1, w2, b2 = params["w1"], params["b1"], params["w2"], params["b2"]
    assert tuple(w1.shape[2:]) == (1, 1, 1) and tuple(w2.shape[2:]) == (1, 1, 1), \
        "LinearUpSampling uses 1x1x1 convs only"
    Cout = int(w1.shape[0])
    sf = int(scale_factor)
    Do, Ho, Wo = D * sf, H * sf, W * sf
    HW, HoWo = H * W, Ho * Wo

    # Host-side interpolation constants (trace-time numpy).
    lo_np, hi_np, fr_np = _interp_coeffs(D, Do)
    mhw_t = jnp.asarray(np.kron(_interp_matrix(H, Ho), _interp_matrix(W, Wo)).T)  # (HW, HoWo)
    lo = jnp.asarray(lo_np)
    hi = jnp.asarray(hi_np)
    fr = jnp.asarray(fr_np)

    # Only the (small, pre-upsample) input gets transposed: NCDHW -> (N, D, Cin, H*W).
    x4 = jnp.transpose(x, (0, 2, 1, 3, 4)).reshape(N, D, Cin, HW).astype(jnp.float32)
    W1 = w1.reshape(Cout, Cin).astype(jnp.float32)

    td = _pick_do_tile(Do)
    grid = (N, Do // td)
    cparams = pltpu.CompilerParams(dimension_semantics=("parallel", "parallel"))
    smem_spec = pl.BlockSpec(memory_space=pltpu.MemorySpace.SMEM)

    if skipx is not None:
        Cskip = int(skipx.shape[1])
        assert tuple(skipx.shape) == (N, Cskip, Do, Ho, Wo), skipx.shape
        C2 = int(w2.shape[1])
        assert C2 == Cout + Cskip, "conv2 in_channels must equal outChans + skip channels"
        W2 = w2.reshape(Cout, C2).astype(jnp.float32)
        W2y, W2s = W2[:, :Cout], W2[:, Cout:]
        # 1x1x1 convs commute with the (linear) trilinear interpolation, so the y-branch
        # of conv2 is folded into conv1: Weff = W2y @ W1, beff = W2y @ b1 + b2.
        weff = W2y @ W1
        beff = (W2y @ b1.astype(jnp.float32) + b2.astype(jnp.float32)).reshape(Cout, 1)
        skip4 = skipx.reshape(N, Cskip, Do, HoWo).astype(jnp.float32)   # free reshape

        flops = 2 * N * Do * (Cout * Cin * HW + Cout * HW * HoWo + Cout * Cskip * HoWo)
        bytes_accessed = 4 * (int(x4.size) + int(skip4.size) + N * Cout * Do * HoWo
                              + int(weff.size) + int(W2s.size) + int(mhw_t.size) + Cout)

        out = pl.pallas_call(
            _fused_skip_kernel,
            out_shape=jax.ShapeDtypeStruct((N, Cout, Do, HoWo), jnp.float32),
            grid=grid,
            in_specs=[
                smem_spec, smem_spec, smem_spec,                            # lo, hi, frac
                pl.BlockSpec((1, D, Cin, HW), lambda n, j: (n, 0, 0, 0)),   # x (whole depth)
                pl.BlockSpec((1, Cskip, td, HoWo), lambda n, j: (n, 0, j, 0)),
                pl.BlockSpec((Cout, Cin), lambda n, j: (0, 0)),             # Weff
                pl.BlockSpec((Cout, Cskip), lambda n, j: (0, 0)),           # W2s
                pl.BlockSpec((Cout, 1), lambda n, j: (0, 0)),               # beff
                pl.BlockSpec((HW, HoWo), lambda n, j: (0, 0)),              # (Mh (x) Mw)^T
            ],
            out_specs=pl.BlockSpec((1, Cout, td, HoWo), lambda n, j: (n, 0, j, 0)),
            compiler_params=cparams,
            cost_estimate=pl.CostEstimate(flops=int(flops), transcendentals=0,
                                          bytes_accessed=int(bytes_accessed)),
        )(lo, hi, fr, x4, skip4, weff, W2s, beff, mhw_t)
        return out.reshape(N, Cout, Do, Ho, Wo)                             # free reshape

    # skipx is None: just conv1 + trilinear upsample.
    beff = b1.astype(jnp.float32).reshape(Cout, 1)
    flops = 2 * N * Do * (Cout * Cin * HW + Cout * HW * HoWo)
    bytes_accessed = 4 * (int(x4.size) + N * Cout * Do * HoWo
                          + int(W1.size) + int(mhw_t.size) + Cout)
    out = pl.pallas_call(
        _fused_noskip_kernel,
        out_shape=jax.ShapeDtypeStruct((N, Cout, Do, HoWo), jnp.float32),
        grid=grid,
        in_specs=[
            smem_spec, smem_spec, smem_spec,
            pl.BlockSpec((1, D, Cin, HW), lambda n, j: (n, 0, 0, 0)),
            pl.BlockSpec((Cout, Cin), lambda n, j: (0, 0)),
            pl.BlockSpec((Cout, 1), lambda n, j: (0, 0)),
            pl.BlockSpec((HW, HoWo), lambda n, j: (0, 0)),
        ],
        out_specs=pl.BlockSpec((1, Cout, td, HoWo), lambda n, j: (n, 0, j, 0)),
        compiler_params=cparams,
        cost_estimate=pl.CostEstimate(flops=int(flops), transcendentals=0,
                                      bytes_accessed=int(bytes_accessed)),
    )(lo, hi, fr, x4, W1, beff, mhw_t)
    return out.reshape(N, Cout, Do, Ho, Wo)


# ---------------------------------------------------------------------------
# Pure-JAX reference (unfused einsum) for correctness check
# ---------------------------------------------------------------------------
def reference_forward(x, skipx, params, scale_factor=2):
    N, Cin, D, H, W = x.shape
    w1, b1, w2, b2 = params["w1"], params["b1"], params["w2"], params["b2"]
    Cout = w1.shape[0]
    y = (jnp.einsum("ncdhw,oc->nodhw", x, w1.reshape(Cout, Cin))
         + b1[None, :, None, None, None])
    Do, Ho, Wo = D * scale_factor, H * scale_factor, W * scale_factor
    Md = jnp.asarray(_interp_matrix(D, Do))
    Mh = jnp.asarray(_interp_matrix(H, Ho))
    Mw = jnp.asarray(_interp_matrix(W, Wo))
    y = jnp.einsum("ncdhw,ed->ncehw", y, Md)
    y = jnp.einsum("ncdhw,eh->ncdew", y, Mh)
    y = jnp.einsum("ncdhw,ew->ncdhe", y, Mw)
    if skipx is None:
        return y
    cat = jnp.concatenate([y, skipx], axis=1)
    out = (jnp.einsum("ncdhw,oc->nodhw", cat, w2.reshape(Cout, cat.shape[1]))
           + b2[None, :, None, None, None])
    return out


if __name__ == "__main__":
    # Module config: inChans=4, outChans=2, scale_factor=2, trilinear, align_corners=True
    inChans, outChans, sf = 4, 2, 2
    N, D, H, W = 2, 4, 4, 4
    skip_ch = inChans - outChans          # cat channels == conv2.in_channels

    key = jax.random.PRNGKey(0)
    kx, ks, kw1, kb1, kw2, kb2 = jax.random.split(key, 6)

    x = jax.random.normal(kx, (N, inChans, D, H, W), dtype=jnp.float32)
    skipx = jax.random.normal(ks, (N, skip_ch, D * sf, H * sf, W * sf), dtype=jnp.float32)

    params = {
        "w1": jax.random.normal(kw1, (outChans, inChans, 1, 1, 1), jnp.float32) * 0.1,
        "b1": jax.random.normal(kb1, (outChans,), jnp.float32) * 0.1,
        "w2": jax.random.normal(kw2, (outChans, inChans, 1, 1, 1), jnp.float32) * 0.1,
        "b2": jax.random.normal(kb2, (outChans,), jnp.float32) * 0.1,
    }

    # With skip connection (conv1 -> upsample -> concat -> conv2)
    out = jax.block_until_ready(linear_upsampling_forward(x, skipx, params, scale_factor=sf))
    ref = reference_forward(x, skipx, params, scale_factor=sf)
    assert out.shape == (N, outChans, D * sf, H * sf, W * sf), out.shape
    np.testing.assert_allclose(np.asarray(out), np.asarray(ref), rtol=1e-4, atol=1e-4)

    # Without skip connection (conv1 -> upsample)
    out2 = jax.block_until_ready(linear_upsampling_forward(x, None, params, scale_factor=sf))
    ref2 = reference_forward(x, None, params, scale_factor=sf)
    np.testing.assert_allclose(np.asarray(out2), np.asarray(ref2), rtol=1e-4, atol=1e-4)

    print("KERNEL_OK")
</pallas_src>

<mosaic_0001>
module attributes {stable_mosaic.version = 11 : i64} {
  func.func @_fused_skip_kernel(%arg0: i32, %arg1: i32, %arg2: memref<8xi32, #tpu.memory_space<smem>>, %arg3: memref<8xi32, #tpu.memory_space<smem>>, %arg4: memref<8xf32, #tpu.memory_space<smem>>, %arg5: memref<1x4x4x16xf32, #tpu.memory_space<vmem>>, %arg6: memref<1x2x8x64xf32, #tpu.memory_space<vmem>>, %arg7: memref<2x4xf32, #tpu.memory_space<vmem>>, %arg8: memref<2x2xf32, #tpu.memory_space<vmem>>, %arg9: memref<2x1xf32, #tpu.memory_space<vmem>>, %arg10: memref<16x64xf32, #tpu.memory_space<vmem>>, %arg11: memref<1x2x8x64xf32, #tpu.memory_space<vmem>>) attributes {dimension_semantics = [#tpu.dimension_semantics<parallel>, #tpu.dimension_semantics<parallel>], iteration_bounds = array<i64: 2, 1>, scalar_prefetch = 0 : i64, scratch_operands = 0 : i64, tpu.core_type = #tpu.core_type<tc>, window_params = [{transform_indices = @transform_0, window_bounds = array<i64: 8>}, {transform_indices = @transform_1, window_bounds = array<i64: 8>}, {transform_indices = @transform_2, window_bounds = array<i64: 8>}, {transform_indices = @transform_3, window_bounds = array<i64: 1, 4, 4, 16>}, {transform_indices = @transform_4, window_bounds = array<i64: 1, 2, 8, 64>}, {pipeline_mode = #tpu.pipeline_mode<synchronous>, transform_indices = @transform_5, window_bounds = array<i64: 2, 4>}, {pipeline_mode = #tpu.pipeline_mode<synchronous>, transform_indices = @transform_6, window_bounds = array<i64: 2, 2>}, {pipeline_mode = #tpu.pipeline_mode<synchronous>, transform_indices = @transform_7, window_bounds = array<i64: 2, 1>}, {pipeline_mode = #tpu.pipeline_mode<synchronous>, transform_indices = @transform_8, window_bounds = array<i64: 16, 64>}, {transform_indices = @transform_9, window_bounds = array<i64: 1, 2, 8, 64>}]} {
    %c0 = arith.constant 0 : index
    %c0_0 = arith.constant 0 : index
    %0 = vector.load %arg7[%c0, %c0_0] : memref<2x4xf32, #tpu.memory_space<vmem>>, vector<2x4xf32>
    %c0_1 = arith.constant 0 : index
    %c0_2 = arith.constant 0 : index
    %1 = vector.load %arg8[%c0_1, %c0_2] : memref<2x2xf32, #tpu.memory_space<vmem>>, vector<2x2xf32>
    %c0_3 = arith.constant 0 : index
    %c0_4 = arith.constant 0 : index
    %2 = vector.load %arg9[%c0_3, %c0_4] : memref<2x1xf32, #tpu.memory_space<vmem>>, vector<2x1xf32>
    %c0_5 = arith.constant 0 : index
    %c0_6 = arith.constant 0 : index
    %3 = vector.load %arg10[%c0_5, %c0_6] : memref<16x64xf32, #tpu.memory_space<vmem>>, vector<16x64xf32>
    %c8_i32 = arith.constant 8 : i32
    %4 = arith.muli %arg1, %c8_i32 : i32
    %c0_i32 = arith.constant 0 : i32
    %5 = arith.addi %4, %c0_i32 : i32
    %6 = arith.index_cast %5 : i32 to index
    %7 = memref.load %arg2[%6] : memref<8xi32, #tpu.memory_space<smem>>
    %8 = arith.index_cast %5 : i32 to index
    %9 = memref.load %arg3[%8] : memref<8xi32, #tpu.memory_space<smem>>
    %10 = arith.index_cast %5 : i32 to index
    %11 = memref.load %arg4[%10] : memref<8xf32, #tpu.memory_space<smem>>
    %c0_7 = arith.constant 0 : index
    %12 = arith.index_cast %7 : i32 to index
    %c0_8 = arith.constant 0 : index
    %c0_9 = arith.constant 0 : index
    %13 = vector.load %arg5[%c0_7, %12, %c0_8, %c0_9] : memref<1x4x4x16xf32, #tpu.memory_space<vmem>>, vector<1x1x4x16xf32>
    %14 = vector.shape_cast %13 : vector<1x1x4x16xf32> to vector<4x16xf32>
    %c0_10 = arith.constant 0 : index
    %15 = arith.index_cast %9 : i32 to index
    %c0_11 = arith.constant 0 : index
    %c0_12 = arith.constant 0 : index
    %16 = vector.load %arg5[%c0_10, %15, %c0_11, %c0_12] : memref<1x4x4x16xf32, #tpu.memory_space<vmem>>, vector<1x1x4x16xf32>
    %17 = vector.shape_cast %16 : vector<1x1x4x16xf32> to vector<4x16xf32>
    %18 = arith.subf %17, %14 : vector<4x16xf32>
    %19 = vector.broadcast %11 : f32 to vector<4x16xf32>
    %20 = arith.mulf %19, %18 : vector<4x16xf32>
    %21 = arith.addf %14, %20 : vector<4x16xf32>
    %cst = arith.constant dense<0.000000e+00> : vector<2x16xf32>
    %22 = tpu.matmul %0, %21, %cst {dimension_numbers = #tpu.dot_dimension_numbers<[1], [0], [0], [1], [0, 0, 1, 1], [], []>} : vector<2x4xf32>, vector<4x16xf32>, vector<2x16xf32> -> vector<2x16xf32>
    %cst_13 = arith.constant dense<0.000000e+00> : vector<2x64xf32>
    %23 = tpu.matmul %22, %3, %cst_13 {dimension_numbers = #tpu.dot_dimension_numbers<[1], [0], [0], [1], [0, 0, 1, 1], [], []>} : vector<2x16xf32>, vector<16x64xf32>, vector<2x64xf32> -> vector<2x64xf32>
    %c0_14 = arith.constant 0 : index
    %c0_15 = arith.constant 0 : index
    %c0_16 = arith.constant 0 : index
    %c0_17 = arith.constant 0 : index
    %24 = vector.load %arg6[%c0_14, %c0_15, %c0_16, %c0_17] : memref<1x2x8x64xf32, #tpu.memory_space<vmem>>, vector<1x2x1x64xf32>
    %25 = vector.shape_cast %24 : vector<1x2x1x64xf32> to vector<2x64xf32>
    %cst_18 = arith.constant dense<0.000000e+00> : vector<2x64xf32>
    %26 = tpu.matmul %1, %25, %cst_18 {dimension_numbers = #tpu.dot_dimension_numbers<[1], [0], [0], [1], [0, 0, 1, 1], [], []>} : vector<2x2xf32>, vector<2x64xf32>, vector<2x64xf32> -> vector<2x64xf32>
    %27 = arith.addf %23, %26 : vector<2x64xf32>
    %28 = vector.broadcast %2 : vector<2x1xf32> to vector<2x64xf32>
    %29 = arith.addf %27, %28 : vector<2x64xf32>
    %c0_19 = arith.constant 0 : index
    %c0_20 = arith.constant 0 : index
    %c0_21 = arith.constant 0 : index
    %c0_22 = arith.constant 0 : index
    %30 = vector.load %arg11[%c0_19, %c0_20, %c0_21, %c0_22] : memref<1x2x8x64xf32, #tpu.memory_space<vmem>>, vector<1x2x1x64xf32>
    %31 = vector.shape_cast %30 : vector<1x2x1x64xf32> to vector<2x64xf32>
    %32 = vector.shape_cast %29 : vector<2x64xf32> to vector<1x2x1x64xf32>
    tpu.vector_store %arg11[%c0_19, %c0_20, %c0_21, %c0_22], %32 {strides = array<i32>} : memref<1x2x8x64xf32, #tpu.memory_space<vmem>>, vector<1x2x1x64xf32>,
    %c8_i32_23 = arith.constant 8 : i32
    %33 = arith.muli %arg1, %c8_i32_23 : i32
    %c1_i32 = arith.constant 1 : i32
    %34 = arith.addi %33, %c1_i32 : i32
    %35 = arith.index_cast %34 : i32 to index
    %36 = memref.load %arg2[%35] : memref<8xi32, #tpu.memory_space<smem>>
    %37 = arith.index_cast %34 : i32 to index
    %38 = memref.load %arg3[%37] : memref<8xi32, #tpu.memory_space<smem>>
    %39 = arith.index_cast %34 : i32 to index
    %40 = memref.load %arg4[%39] : memref<8xf32, #tpu.memory_space<smem>>
    %c0_24 = arith.constant 0 : index
    %41 = arith.index_cast %36 : i32 to index
    %c0_25 = arith.constant 0 : index
    %c0_26 = arith.constant 0 : index
    %42 = vector.load %arg5[%c0_24, %41, %c0_25, %c0_26] : memref<1x4x4x16xf32, #tpu.memory_space<vmem>>, vector<1x1x4x16xf32>
    %43 = vector.shape_cast %42 : vector<1x1x4x16xf32> to vector<4x16xf32>
    %c0_27 = arith.constant 0 : index
    %44 = arith.index_cast %38 : i32 to index
    %c0_28 = arith.constant 0 : index
    %c0_29 = arith.constant 0 : index
    %45 = vector.load %arg5[%c0_27, %44, %c0_28, %c0_29] : memref<1x4x4x16xf32, #tpu.memory_space<vmem>>, vector<1x1x4x16xf32>
    %46 = vector.shape_cast %45 : vector<1x1x4x16xf32> to vector<4x16xf32>
    %47 = arith.subf %46, %43 : vector<4x16xf32>
    %48 = vector.broadcast %40 : f32 to vector<4x16xf32>
    %49 = arith.mulf %48, %47 : vector<4x16xf32>
    %50 = arith.addf %43, %49 : vector<4x16xf32>
    %cst_30 = arith.constant dense<0.000000e+00> : vector<2x16xf32>
    %51 = tpu.matmul %0, %50, %cst_30 {dimension_numbers = #tpu.dot_dimension_numbers<[1], [0], [0], [1], [0, 0, 1, 1], [], []>} : vector<2x4xf32>, vector<4x16xf32>, vector<2x16xf32> -> vector<2x16xf32>
    %cst_31 = arith.constant dense<0.000000e+00> : vector<2x64xf32>
    %52 = tpu.matmul %51, %3, %cst_31 {dimension_numbers = #tpu.dot_dimension_numbers<[1], [0], [0], [1], [0, 0, 1, 1], [], []>} : vector<2x16xf32>, vector<16x64xf32>, vector<2x64xf32> -> vector<2x64xf32>
    %c0_32 = arith.constant 0 : index
    %c0_33 = arith.constant 0 : index
    %c1 = arith.constant 1 : index
    %c0_34 = arith.constant 0 : index
    %53 = vector.load %arg6[%c0_32, %c0_33, %c1, %c0_34] : memref<1x2x8x64xf32, #tpu.memory_space<vmem>>, vector<1x2x1x64xf32>
    %54 = vector.shape_cast %53 : vector<1x2x1x64xf32> to vector<2x64xf32>
    %cst_35 = arith.constant dense<0.000000e+00> : vector<2x64xf32>
    %55 = tpu.matmul %1, %54, %cst_35 {dimension_numbers = #tpu.dot_dimension_numbers<[1], [0], [0], [1], [0, 0, 1, 1], [], []>} : vector<2x2xf32>, vector<2x64xf32>, vector<2x64xf32> -> vector<2x64xf32>
    %56 = arith.addf %52, %55 : vector<2x64xf32>
    %57 = vector.broadcast %2 : vector<2x1xf32> to vector<2x64xf32>
    %58 = arith.addf %56, %57 : vector<2x64xf32>
    %c0_36 = arith.constant 0 : index
    %c0_37 = arith.constant 0 : index
    %c1_38 = arith.constant 1 : index
    %c0_39 = arith.constant 0 : index
    %59 = vector.load %arg11[%c0_36, %c0_37, %c1_38, %c0_39] : memref<1x2x8x64xf32, #tpu.memory_space<vmem>>, vector<1x2x1x64xf32>
    %60 = vector.shape_cast %59 : vector<1x2x1x64xf32> to vector<2x64xf32>
    %61 = vector.shape_cast %58 : vector<2x64xf32> to vector<1x2x1x64xf32>
    tpu.vector_store %arg11[%c0_36, %c0_37, %c1_38, %c0_39], %61 {strides = array<i32>} : memref<1x2x8x64xf32, #tpu.memory_space<vmem>>, vector<1x2x1x64xf32>,
    %c8_i32_40 = arith.constant 8 : i32
    %62 = arith.muli %arg1, %c8_i32_40 : i32
    %c2_i32 = arith.constant 2 : i32
    %63 = arith.addi %62, %c2_i32 : i32
    %64 = arith.index_cast %63 : i32 to index
    %65 = memref.load %arg2[%64] : memref<8xi32, #tpu.memory_space<smem>>
    %66 = arith.index_cast %63 : i32 to index
    %67 = memref.load %arg3[%66] : memref<8xi32, #tpu.memory_space<smem>>
    %68 = arith.index_cast %63 : i32 to index
    %69 = memref.load %arg4[%68] : memref<8xf32, #tpu.memory_space<smem>>
    %c0_41 = arith.constant 0 : index
    %70 = arith.index_cast %65 : i32 to index
    %c0_42 = arith.constant 0 : index
    %c0_43 = arith.constant 0 : index
    %71 = vector.load %arg5[%c0_41, %70, %c0_42, %c0_43] : memref<1x4x4x16xf32, #tpu.memory_space<vmem>>, vector<1x1x4x16xf32>
    %72 = vector.shape_cast %71 : vector<1x1x4x16xf32> to vector<4x16xf32>
    %c0_44 = arith.constant 0 : index
    %73 = arith.index_cast %67 : i32 to index
    %c0_45 = arith.constant 0 : index
    %c0_46 = arith.constant 0 : index
    %74 = vector.load %arg5[%c0_44, %73, %c0_45, %c0_46] : memref<1x4x4x16xf32, #tpu.memory_space<vmem>>, vector<1x1x4x16xf32>
    %75 = vector.shape_cast %74 : vector<1x1x4x16xf32> to vector<4x16xf32>
    %76 = arith.subf %75, %72 : vector<4x16xf32>
    %77 = vector.broadcast %69 : f32 to vector<4x16xf32>
    %78 = arith.mulf %77, %76 : vector<4x16xf32>
    %79 = arith.addf %72, %78 : vector<4x16xf32>
    %cst_47 = arith.constant dense<0.000000e+00> : vector<2x16xf32>
    %80 = tpu.matmul %0, %79, %cst_47 {dimension_numbers = #tpu.dot_dimension_numbers<[1], [0], [0], [1], [0, 0, 1, 1], [], []>} : vector<2x4xf32>, vector<4x16xf32>, vector<2x16xf32> -> vector<2x16xf32>
    %cst_48 = arith.constant dense<0.000000e+00> : vector<2x64xf32>
    %81 = tpu.matmul %80, %3, %cst_48 {dimension_numbers = #tpu.dot_dimension_numbers<[1], [0], [0], [1], [0, 0, 1, 1], [], []>} : vector<2x16xf32>, vector<16x64xf32>, vector<2x64xf32> -> vector<2x64xf32>
    %c0_49 = arith.constant 0 : index
    %c0_50 = arith.constant 0 : index
    %c2 = arith.constant 2 : index
    %c0_51 = arith.constant 0 : index
    %82 = vector.load %arg6[%c0_49, %c0_50, %c2, %c0_51] : memref<1x2x8x64xf32, #tpu.memory_space<vmem>>, vector<1x2x1x64xf32>
    %83 = vector.shape_cast %82 : vector<1x2x1x64xf32> to vector<2x64xf32>
    %cst_52 = arith.constant dense<0.000000e+00> : vector<2x64xf32>
    %84 = tpu.matmul %1, %83, %cst_52 {dimension_numbers = #tpu.dot_dimension_numbers<[1], [0], [0], [1], [0, 0, 1, 1], [], []>} : vector<2x2xf32>, vector<2x64xf32>, vector<2x64xf32> -> vector<2x64xf32>
    %85 = arith.addf %81, %84 : vector<2x64xf32>
    %86 = vector.broadcast %2 : vector<2x1xf32> to vector<2x64xf32>
    %87 = arith.addf %85, %86 : vector<2x64xf32>
    %c0_53 = arith.constant 0 : index
    %c0_54 = arith.constant 0 : index
    %c2_55 = arith.constant 2 : index
    %c0_56 = arith.constant 0 : index
    %88 = vector.load %arg11[%c0_53, %c0_54, %c2_55, %c0_56] : memref<1x2x8x64xf32, #tpu.memory_space<vmem>>, vector<1x2x1x64xf32>
    %89 = vector.shape_cast %88 : vector<1x2x1x64xf32> to vector<2x64xf32>
    %90 = vector.shape_cast %87 : vector<2x64xf32> to vector<1x2x1x64xf32>
    tpu.vector_store %arg11[%c0_53, %c0_54, %c2_55, %c0_56], %90 {strides = array<i32>} : memref<1x2x8x64xf32, #tpu.memory_space<vmem>>, vector<1x2x1x64xf32>,
    %c8_i32_57 = arith.constant 8 : i32
    %91 = arith.muli %arg1, %c8_i32_57 : i32
    %c3_i32 = arith.constant 3 : i32
    %92 = arith.addi %91, %c3_i32 : i32
    %93 = arith.index_cast %92 : i32 to index
    %94 = memref.load %arg2[%93] : memref<8xi32, #tpu.memory_space<smem>>
    %95 = arith.index_cast %92 : i32 to index
    %96 = memref.load %arg3[%95] : memref<8xi32, #tpu.memory_space<smem>>
    %97 = arith.index_cast %92 : i32 to index
    %98 = memref.load %arg4[%97] : memref<8xf32, #tpu.memory_space<smem>>
    %c0_58 = arith.constant 0 : index
    %99 = arith.index_cast %94 : i32 to index
    %c0_59 = arith.constant 0 : index
    %c0_60 = arith.constant 0 : index
    %100 = vector.load %arg5[%c0_58, %99, %c0_59, %c0_60] : memref<1x4x4x16xf32, #tpu.memory_space<vmem>>, vector<1x1x4x16xf32>
    %101 = vector.shape_cast %100 : vector<1x1x4x16xf32> to vector<4x16xf32>
    %c0_61 = arith.constant 0 : index
    %102 = arith.index_cast %96 : i32 to index
    %c0_62 = arith.constant 0 : index
    %c0_63 = arith.constant 0 : index
    %103 = vector.load %arg5[%c0_61, %102, %c0_62, %c0_63] : memref<1x4x4x16xf32, #tpu.memory_space<vmem>>, vector<1x1x4x16xf32>
    %104 = vector.shape_cast %103 : vector<1x1x4x16xf32> to vector<4x16xf32>
    %105 = arith.subf %104, %101 : vector<4x16xf32>
    %106 = vector.broadcast %98 : f32 to vector<4x16xf32>
    %107 = arith.mulf %106, %105 : vector<4x16xf32>
    %108 = arith.addf %101, %107 : vector<4x16xf32>
    %cst_64 = arith.constant dense<0.000000e+00> : vector<2x16xf32>
    %109 = tpu.matmul %0, %108, %cst_64 {dimension_numbers = #tpu.dot_dimension_numbers<[1], [0], [0], [1], [0, 0, 1, 1], [], []>} : vector<2x4xf32>, vector<4x16xf32>, vector<2x16xf32> -> vector<2x16xf32>
    %cst_65 = arith.constant dense<0.000000e+00> : vector<2x64xf32>
    %110 = tpu.matmul %109, %3, %cst_65 {dimension_numbers = #tpu.dot_dimension_numbers<[1], [0], [0], [1], [0, 0, 1, 1], [], []>} : vector<2x16xf32>, vector<16x64xf32>, vector<2x64xf32> -> vector<2x64xf32>
    %c0_66 = arith.constant 0 : index
    %c0_67 = arith.constant 0 : index
    %c3 = arith.constant 3 : index
    %c0_68 = arith.constant 0 : index
    %111 = vector.load %arg6[%c0_66, %c0_67, %c3, %c0_68] : memref<1x2x8x64xf32, #tpu.memory_space<vmem>>, vector<1x2x1x64xf32>
    %112 = vector.shape_cast %111 : vector<1x2x1x64xf32> to vector<2x64xf32>
    %cst_69 = arith.constant dense<0.000000e+00> : vector<2x64xf32>
    %113 = tpu.matmul %1, %112, %cst_69 {dimension_numbers = #tpu.dot_dimension_numbers<[1], [0], [0], [1], [0, 0, 1, 1], [], []>} : vector<2x2xf32>, vector<2x64xf32>, vector<2x64xf32> -> vector<2x64xf32>
    %114 = arith.addf %110, %113 : vector<2x64xf32>
    %115 = vector.broadcast %2 : vector<2x1xf32> to vector<2x64xf32>
    %116 = arith.addf %114, %115 : vector<2x64xf32>
    %c0_70 = arith.constant 0 : index
    %c0_71 = arith.constant 0 : index
    %c3_72 = arith.constant 3 : index
    %c0_73 = arith.constant 0 : index
    %117 = vector.load %arg11[%c0_70, %c0_71, %c3_72, %c0_73] : memref<1x2x8x64xf32, #tpu.memory_space<vmem>>, vector<1x2x1x64xf32>
    %118 = vector.shape_cast %117 : vector<1x2x1x64xf32> to vector<2x64xf32>
    %119 = vector.shape_cast %116 : vector<2x64xf32> to vector<1x2x1x64xf32>
    tpu.vector_store %arg11[%c0_70, %c0_71, %c3_72, %c0_73], %119 {strides = array<i32>} : memref<1x2x8x64xf32, #tpu.memory_space<vmem>>, vector<1x2x1x64xf32>,
    %c8_i32_74 = arith.constant 8 : i32
    %120 = arith.muli %arg1, %c8_i32_74 : i32
    %c4_i32 = arith.constant 4 : i32
    %121 = arith.addi %120, %c4_i32 : i32
    %122 = arith.index_cast %121 : i32 to index
    %123 = memref.load %arg2[%122] : memref<8xi32, #tpu.memory_space<smem>>
    %124 = arith.index_cast %121 : i32 to index
    %125 = memref.load %arg3[%124] : memref<8xi32, #tpu.memory_space<smem>>
    %126 = arith.index_cast %121 : i32 to index
    %127 = memref.load %arg4[%126] : memref<8xf32, #tpu.memory_space<smem>>
    %c0_75 = arith.constant 0 : index
    %128 = arith.index_cast %123 : i32 to index
    %c0_76 = arith.constant 0 : index
    %c0_77 = arith.constant 0 : index
    %129 = vector.load %arg5[%c0_75, %128, %c0_76, %c0_77] : memref<1x4x4x16xf32, #tpu.memory_space<vmem>>, vector<1x1x4x16xf32>
    %130 = vector.shape_cast %129 : vector<1x1x4x16xf32> to vector<4x16xf32>
    %c0_78 = arith.constant 0 : index
    %131 = arith.index_cast %125 : i32 to index
    %c0_79 = arith.constant 0 : index
    %c0_80 = arith.constant 0 : index
    %132 = vector.load %arg5[%c0_78, %131, %c0_79, %c0_80] : memref<1x4x4x16xf32, #tpu.memory_space<vmem>>, vector<1x1x4x16xf32>
    %133 = vector.shape_cast %132 : vector<1x1x4x16xf32> to vector<4x16xf32>
    %134 = arith.subf %133, %130 : vector<4x16xf32>
    %135 = vector.broadcast %127 : f32 to vector<4x16xf32>
    %136 = arith.mulf %135, %134 : vector<4x16xf32>
    %137 = arith.addf %130, %136 : vector<4x16xf32>
    %cst_81 = arith.constant dense<0.000000e+00> : vector<2x16xf32>
    %138 = tpu.matmul %0, %137, %cst_81 {dimension_numbers = #tpu.dot_dimension_numbers<[1], [0], [0], [1], [0, 0, 1, 1], [], []>} : vector<2x4xf32>, vector<4x16xf32>, vector<2x16xf32> -> vector<2x16xf32>
    %cst_82 = arith.constant dense<0.000000e+00> : vector<2x64xf32>
    %139 = tpu.matmul %138, %3, %cst_82 {dimension_numbers = #tpu.dot_dimension_numbers<[1], [0], [0], [1], [0, 0, 1, 1], [], []>} : vector<2x16xf32>, vector<16x64xf32>, vector<2x64xf32> -> vector<2x64xf32>
    %c0_83 = arith.constant 0 : index
    %c0_84 = arith.constant 0 : index
    %c4 = arith.constant 4 : index
    %c0_85 = arith.constant 0 : index
    %140 = vector.load %arg6[%c0_83, %c0_84, %c4, %c0_85] : memref<1x2x8x64xf32, #tpu.memory_space<vmem>>, vector<1x2x1x64xf32>
    %141 = vector.shape_cast %140 : vector<1x2x1x64xf32> to vector<2x64xf32>
    %cst_86 = arith.constant dense<0.000000e+00> : vector<2x64xf32>
    %142 = tpu.matmul %1, %141, %cst_86 {dimension_numbers = #tpu.dot_dimension_numbers<[1], [0], [0], [1], [0, 0, 1, 1], [], []>} : vector<2x2xf32>, vector<2x64xf32>, vector<2x64xf32> -> vector<2x64xf32>
    %143 = arith.addf %139, %142 : vector<2x64xf32>
    %144 = vector.broadcast %2 : vector<2x1xf32> to vector<2x64xf32>
    %145 = arith.addf %143, %144 : vector<2x64xf32>
    %c0_87 = arith.constant 0 : index
    %c0_88 = arith.constant 0 : index
    %c4_89 = arith.constant 4 : index
    %c0_90 = arith.constant 0 : index
    %146 = vector.load %arg11[%c0_87, %c0_88, %c4_89, %c0_90] : memref<1x2x8x64xf32, #tpu.memory_space<vmem>>, vector<1x2x1x64xf32>
    %147 = vector.shape_cast %146 : vector<1x2x1x64xf32> to vector<2x64xf32>
    %148 = vector.shape_cast %145 : vector<2x64xf32> to vector<1x2x1x64xf32>
    tpu.vector_store %arg11[%c0_87, %c0_88, %c4_89, %c0_90], %148 {strides = array<i32>} : memref<1x2x8x64xf32, #tpu.memory_space<vmem>>, vector<1x2x1x64xf32>,
    %c8_i32_91 = arith.constant 8 : i32
    %149 = arith.muli %arg1, %c8_i32_91 : i32
    %c5_i32 = arith.constant 5 : i32
    %150 = arith.addi %149, %c5_i32 : i32
    %151 = arith.index_cast %150 : i32 to index
    %152 = memref.load %arg2[%151] : memref<8xi32, #tpu.memory_space<smem>>
    %153 = arith.index_cast %150 : i32 to index
    %154 = memref.load %arg3[%153] : memref<8xi32, #tpu.memory_space<smem>>
    %155 = arith.index_cast %150 : i32 to index
    %156 = memref.load %arg4[%155] : memref<8xf32, #tpu.memory_space<smem>>
    %c0_92 = arith.constant 0 : index
    %157 = arith.index_cast %152 : i32 to index
    %c0_93 = arith.constant 0 : index
    %c0_94 = arith.constant 0 : index
    %158 = vector.load %arg5[%c0_92, %157, %c0_93, %c0_94] : memref<1x4x4x16xf32, #tpu.memory_space<vmem>>, vector<1x1x4x16xf32>
    %159 = vector.shape_cast %158 : vector<1x1x4x16xf32> to vector<4x16xf32>
    %c0_95 = arith.constant 0 : index
    %160 = arith.index_cast %154 : i32 to index
    %c0_96 = arith.constant 0 : index
    %c0_97 = arith.constant 0 : index
    %161 = vector.load %arg5[%c0_95, %160, %c0_96, %c0_97] : memref<1x4x4x16xf32, #tpu.memory_space<vmem>>, vector<1x1x4x16xf32>
    %162 = vector.shape_cast %161 : vector<1x1x4x16xf32> to vector<4x16xf32>
    %163 = arith.subf %162, %159 : vector<4x16xf32>
    %164 = vector.broadcast %156 : f32 to vector<4x16xf32>
    %165 = arith.mulf %164, %163 : vector<4x16xf32>
    %166 = arith.addf %159, %165 : vector<4x16xf32>
    %cst_98 = arith.constant dense<0.000000e+00> : vector<2x16xf32>
    %167 = tpu.matmul %0, %166, %cst_98 {dimension_numbers = #tpu.dot_dimension_numbers<[1], [0], [0], [1], [0, 0, 1, 1], [], []>} : vector<2x4xf32>, vector<4x16xf32>, vector<2x16xf32> -> vector<2x16xf32>
    %cst_99 = arith.constant dense<0.000000e+00> : vector<2x64xf32>
    %168 = tpu.matmul %167, %3, %cst_99 {dimension_numbers = #tpu.dot_dimension_numbers<[1], [0], [0], [1], [0, 0, 1, 1], [], []>} : vector<2x16xf32>, vector<16x64xf32>, vector<2x64xf32> -> vector<2x64xf32>
    %c0_100 = arith.constant 0 : index
    %c0_101 = arith.constant 0 : index
    %c5 = arith.constant 5 : index
    %c0_102 = arith.constant 0 : index
    %169 = vector.load %arg6[%c0_100, %c0_101, %c5, %c0_102] : memref<1x2x8x64xf32, #tpu.memory_space<vmem>>, vector<1x2x1x64xf32>
    %170 = vector.shape_cast %169 : vector<1x2x1x64xf32> to vector<2x64xf32>
    %cst_103 = arith.constant dense<0.000000e+00> : vector<2x64xf32>
    %171 = tpu.matmul %1, %170, %cst_103 {dimension_numbers = #tpu.dot_dimension_numbers<[1], [0], [0], [1], [0, 0, 1, 1], [], []>} : vector<2x2xf32>, vector<2x64xf32>, vector<2x64xf32> -> vector<2x64xf32>
    %172 = arith.addf %168, %171 : vector<2x64xf32>
    %173 = vector.broadcast %2 : vector<2x1xf32> to vector<2x64xf32>
    %174 = arith.addf %172, %173 : vector<2x64xf32>
    %c0_104 = arith.constant 0 : index
    %c0_105 = arith.constant 0 : index
    %c5_106 = arith.constant 5 : index
    %c0_107 = arith.constant 0 : index
    %175 = vector.load %arg11[%c0_104, %c0_105, %c5_106, %c0_107] : memref<1x2x8x64xf32, #tpu.memory_space<vmem>>, vector<1x2x1x64xf32>
    %176 = vector.shape_cast %175 : vector<1x2x1x64xf32> to vector<2x64xf32>
    %177 = vector.shape_cast %174 : vector<2x64xf32> to vector<1x2x1x64xf32>
    tpu.vector_store %arg11[%c0_104, %c0_105, %c5_106, %c0_107], %177 {strides = array<i32>} : memref<1x2x8x64xf32, #tpu.memory_space<vmem>>, vector<1x2x1x64xf32>,
    %c8_i32_108 = arith.constant 8 : i32
    %178 = arith.muli %arg1, %c8_i32_108 : i32
    %c6_i32 = arith.constant 6 : i32
    %179 = arith.addi %178, %c6_i32 : i32
    %180 = arith.index_cast %179 : i32 to index
    %181 = memref.load %arg2[%180] : memref<8xi32, #tpu.memory_space<smem>>
    %182 = arith.index_cast %179 : i32 to index
    %183 = memref.load %arg3[%182] : memref<8xi32, #tpu.memory_space<smem>>
    %184 = arith.index_cast %179 : i32 to index
    %185 = memref.load %arg4[%184] : memref<8xf32, #tpu.memory_space<smem>>
    %c0_109 = arith.constant 0 : index
    %186 = arith.index_cast %181 : i32 to index
    %c0_110 = arith.constant 0 : index
    %c0_111 = arith.constant 0 : index
    %187 = vector.load %arg5[%c0_109, %186, %c0_110, %c0_111] : memref<1x4x4x16xf32, #tpu.memory_space<vmem>>, vector<1x1x4x16xf32>
    %188 = vector.shape_cast %187 : vector<1x1x4x16xf32> to vector<4x16xf32>
    %c0_112 = arith.constant 0 : index
    %189 = arith.index_cast %183 : i32 to index
    %c0_113 = arith.constant 0 : index
    %c0_114 = arith.constant 0 : index
    %190 = vector.load %arg5[%c0_112, %189, %c0_113, %c0_114] : memref<1x4x4x16xf32, #tpu.memory_space<vmem>>, vector<1x1x4x16xf32>
    %191 = vector.shape_cast %190 : vector<1x1x4x16xf32> to vector<4x16xf32>
    %192 = arith.subf %191, %188 : vector<4x16xf32>
    %193 = vector.broadcast %185 : f32 to vector<4x16xf32>
    %194 = arith.mulf %193, %192 : vector<4x16xf32>
    %195 = arith.addf %188, %194 : vector<4x16xf32>
    %cst_115 = arith.constant dense<0.000000e+00> : vector<2x16xf32>
    %196 = tpu.matmul %0, %195, %cst_115 {dimension_numbers = #tpu.dot_dimension_numbers<[1], [0], [0], [1], [0, 0, 1, 1], [], []>} : vector<2x4xf32>, vector<4x16xf32>, vector<2x16xf32> -> vector<2x16xf32>
    %cst_116 = arith.constant dense<0.000000e+00> : vector<2x64xf32>
    %197 = tpu.matmul %196, %3, %cst_116 {dimension_numbers = #tpu.dot_dimension_numbers<[1], [0], [0], [1], [0, 0, 1, 1], [], []>} : vector<2x16xf32>, vector<16x64xf32>, vector<2x64xf32> -> vector<2x64xf32>
    %c0_117 = arith.constant 0 : index
    %c0_118 = arith.constant 0 : index
    %c6 = arith.constant 6 : index
    %c0_119 = arith.constant 0 : index
    %198 = vector.load %arg6[%c0_117, %c0_118, %c6, %c0_119] : memref<1x2x8x64xf32, #tpu.memory_space<vmem>>, vector<1x2x1x64xf32>
    %199 = vector.shape_cast %198 : vector<1x2x1x64xf32> to vector<2x64xf32>
    %cst_120 = arith.constant dense<0.000000e+00> : vector<2x64xf32>
    %200 = tpu.matmul %1, %199, %cst_120 {dimension_numbers = #tpu.dot_dimension_numbers<[1], [0], [0], [1], [0, 0, 1, 1], [], []>} : vector<2x2xf32>, vector<2x64xf32>, vector<2x64xf32> -> vector<2x64xf32>
    %201 = arith.addf %197, %200 : vector<2x64xf32>
    %202 = vector.broadcast %2 : vector<2x1xf32> to vector<2x64xf32>
    %203 = arith.addf %201, %202 : vector<2x64xf32>
    %c0_121 = arith.constant 0 : index
    %c0_122 = arith.constant 0 : index
    %c6_123 = arith.constant 6 : index
    %c0_124 = arith.constant 0 : index
    %204 = vector.load %arg11[%c0_121, %c0_122, %c6_123, %c0_124] : memref<1x2x8x64xf32, #tpu.memory_space<vmem>>, vector<1x2x1x64xf32>
    %205 = vector.shape_cast %204 : vector<1x2x1x64xf32> to vector<2x64xf32>
    %206 = vector.shape_cast %203 : vector<2x64xf32> to vector<1x2x1x64xf32>
    tpu.vector_store %arg11[%c0_121, %c0_122, %c6_123, %c0_124], %206 {strides = array<i32>} : memref<1x2x8x64xf32, #tpu.memory_space<vmem>>, vector<1x2x1x64xf32>,
    %c8_i32_125 = arith.constant 8 : i32
    %207 = arith.muli %arg1, %c8_i32_125 : i32
    %c7_i32 = arith.constant 7 : i32
    %208 = arith.addi %207, %c7_i32 : i32
    %209 = arith.index_cast %208 : i32 to index
    %210 = memref.load %arg2[%209] : memref<8xi32, #tpu.memory_space<smem>>
    %211 = arith.index_cast %208 : i32 to index
    %212 = memref.load %arg3[%211] : memref<8xi32, #tpu.memory_space<smem>>
    %213 = arith.index_cast %208 : i32 to index
    %214 = memref.load %arg4[%213] : memref<8xf32, #tpu.memory_space<smem>>
    %c0_126 = arith.constant 0 : index
    %215 = arith.index_cast %210 : i32 to index
    %c0_127 = arith.constant 0 : index
    %c0_128 = arith.constant 0 : index
    %216 = vector.load %arg5[%c0_126, %215, %c0_127, %c0_128] : memref<1x4x4x16xf32, #tpu.memory_space<vmem>>, vector<1x1x4x16xf32>
    %217 = vector.shape_cast %216 : vector<1x1x4x16xf32> to vector<4x16xf32>
    %c0_129 = arith.constant 0 : index
    %218 = arith.index_cast %212 : i32 to index
    %c0_130 = arith.constant 0 : index
    %c0_131 = arith.constant 0 : index
    %219 = vector.load %arg5[%c0_129, %218, %c0_130, %c0_131] : memref<1x4x4x16xf32, #tpu.memory_space<vmem>>, vector<1x1x4x16xf32>
    %220 = vector.shape_cast %219 : vector<1x1x4x16xf32> to vector<4x16xf32>
    %221 = arith.subf %220, %217 : vector<4x16xf32>
    %222 = vector.broadcast %214 : f32 to vector<4x16xf32>
    %223 = arith.mulf %222, %221 : vector<4x16xf32>
    %224 = arith.addf %217, %223 : vector<4x16xf32>
    %cst_132 = arith.constant dense<0.000000e+00> : vector<2x16xf32>
    %225 = tpu.matmul %0, %224, %cst_132 {dimension_numbers = #tpu.dot_dimension_numbers<[1], [0], [0], [1], [0, 0, 1, 1], [], []>} : vector<2x4xf32>, vector<4x16xf32>, vector<2x16xf32> -> vector<2x16xf32>
    %cst_133 = arith.constant dense<0.000000e+00> : vector<2x64xf32>
    %226 = tpu.matmul %225, %3, %cst_133 {dimension_numbers = #tpu.dot_dimension_numbers<[1], [0], [0], [1], [0, 0, 1, 1], [], []>} : vector<2x16xf32>, vector<16x64xf32>, vector<2x64xf32> -> vector<2x64xf32>
    %c0_134 = arith.constant 0 : index
    %c0_135 = arith.constant 0 : index
    %c7 = arith.constant 7 : index
    %c0_136 = arith.constant 0 : index
    %227 = vector.load %arg6[%c0_134, %c0_135, %c7, %c0_136] : memref<1x2x8x64xf32, #tpu.memory_space<vmem>>, vector<1x2x1x64xf32>
    %228 = vector.shape_cast %227 : vector<1x2x1x64xf32> to vector<2x64xf32>
    %cst_137 = arith.constant dense<0.000000e+00> : vector<2x64xf32>
    %229 = tpu.matmul %1, %228, %cst_137 {dimension_numbers = #tpu.dot_dimension_numbers<[1], [0], [0], [1], [0, 0, 1, 1], [], []>} : vector<2x2xf32>, vector<2x64xf32>, vector<2x64xf32> -> vector<2x64xf32>
    %230 = arith.addf %226, %229 : vector<2x64xf32>
    %231 = vector.broadcast %2 : vector<2x1xf32> to vector<2x64xf32>
    %232 = arith.addf %230, %231 : vector<2x64xf32>
    %c0_138 = arith.constant 0 : index
    %c0_139 = arith.constant 0 : index
    %c7_140 = arith.constant 7 : index
    %c0_141 = arith.constant 0 : index
    %233 = vector.load %arg11[%c0_138, %c0_139, %c7_140, %c0_141] : memref<1x2x8x64xf32, #tpu.memory_space<vmem>>, vector<1x2x1x64xf32>
    %234 = vector.shape_cast %233 : vector<1x2x1x64xf32> to vector<2x64xf32>
    %235 = vector.shape_cast %232 : vector<2x64xf32> to vector<1x2x1x64xf32>
    tpu.vector_store %arg11[%c0_138, %c0_139, %c7_140, %c0_141], %235 {strides = array<i32>} : memref<1x2x8x64xf32, #tpu.memory_space<vmem>>, vector<1x2x1x64xf32>,
    return
  }
  func.func @transform_0(%arg0: i32, %arg1: i32) -> i32 {
    %c0_i32 = arith.constant 0 : i32
    %c0_i32_0 = arith.constant 0 : i32
    return %c0_i32 : i32
  }
  func.func @transform_1(%arg0: i32, %arg1: i32) -> i32 {
    %c0_i32 = arith.constant 0 : i32
    %c0_i32_0 = arith.constant 0 : i32
    return %c0_i32 : i32
  }
  func.func @transform_2(%arg0: i32, %arg1: i32) -> i32 {
    %c0_i32 = arith.constant 0 : i32
    %c0_i32_0 = arith.constant 0 : i32
    return %c0_i32 : i32
  }
  func.func @transform_3(%arg0: i32, %arg1: i32) -> (i32, i32, i32, i32) {
    %c0_i32 = arith.constant 0 : i32
    %c0_i32_0 = arith.constant 0 : i32
    %c0_i32_1 = arith.constant 0 : i32
    %c0_i32_2 = arith.constant 0 : i32
    return %arg0, %c0_i32, %c0_i32_0, %c0_i32_1 : i32, i32, i32, i32
  }
  func.func @transform_4(%arg0: i32, %arg1: i32) -> (i32, i32, i32, i32) {
    %c0_i32 = arith.constant 0 : i32
    %c0_i32_0 = arith.constant 0 : i32
    %c0_i32_1 = arith.constant 0 : i32
    return %arg0, %c0_i32, %arg1, %c0_i32_0 : i32, i32, i32, i32
  }
  func.func @transform_5(%arg0: i32, %arg1: i32) -> (i32, i32) {
    %c0_i32 = arith.constant 0 : i32
    %c0_i32_0 = arith.constant 0 : i32
    %c0_i32_1 = arith.constant 0 : i32
    return %c0_i32, %c0_i32_0 : i32, i32
  }
  func.func @transform_6(%arg0: i32, %arg1: i32) -> (i32, i32) {
    %c0_i32 = arith.constant 0 : i32
    %c0_i32_0 = arith.constant 0 : i32
    %c0_i32_1 = arith.constant 0 : i32
    return %c0_i32, %c0_i32_0 : i32, i32
  }
  func.func @transform_7(%arg0: i32, %arg1: i32) -> (i32, i32) {
    %c0_i32 = arith.constant 0 : i32
    %c0_i32_0 = arith.constant 0 : i32
    %c0_i32_1 = arith.constant 0 : i32
    return %c0_i32, %c0_i32_0 : i32, i32
  }
  func.func @transform_8(%arg0: i32, %arg1: i32) -> (i32, i32) {
    %c0_i32 = arith.constant 0 : i32
    %c0_i32_0 = arith.constant 0 : i32
    %c0_i32_1 = arith.constant 0 : i32
    return %c0_i32, %c0_i32_0 : i32, i32
  }
  func.func @transform_9(%arg0: i32, %arg1: i32) -> (i32, i32, i32, i32) {
    %c0_i32 = arith.constant 0 : i32
    %c0_i32_0 = arith.constant 0 : i32
    %c0_i32_1 = arith.constant 0 : i32
    return %arg0, %c0_i32, %arg1, %c0_i32_0 : i32, i32, i32, i32
  }
}

</mosaic_0001>

<bundles_post_ra>
// kernel: tpu_custom_call.1
= control target key start
LH: loop header
LB: loop body
LE: loop exit
PB: predicated region body
PF: predicated region fallthrough
CT: control target
= control target key end

     0   :  { %s2332_s0 = inlined_call_operand.hbm [shape: s32[8], index: 0, kind: input, shape index: {}]   ;;  %s2333_s1 = inlined_call_operand.hbm [shape: s32[8], index: 1, kind: input, shape index: {}]   ;;  %s2334_s2 = inlined_call_operand.hbm [shape: f32[8], index: 2, kind: input, shape index: {}]   ;;  %s2335_s3 = inlined_call_operand.hbm [shape: f32[2,4,4,16], index: 3, kind: input, shape index: {}]   ;;  %s2336_s4 = inlined_call_operand.hbm [shape: f32[2,2,8,64], index: 4, kind: input, shape index: {}]   ;;  %s2337_s5 = inlined_call_operand.vmem [shape: f32[2,4], index: 5, kind: input, shape index: {}]   ;;  %s2338_s6 = inlined_call_operand.vmem [shape: f32[2,2], index: 6, kind: input, shape index: {}]   ;;  %s2339_s7 = inlined_call_operand.vmem [shape: f32[2,1], index: 7, kind: input, shape index: {}]   ;;  %s2340_s8 = inlined_call_operand.hbm [shape: f32[16,64], index: 8, kind: input, shape index: {}]   ;;  %s2341_s9 = inlined_call_operand.hbm [shape: f32[2,2,8,64], index: 9, kind: output, shape index: {}]  }
   0x1   :  { %2349 = sst [smem:[#allocation26_spill]] %s2332_s0 }
   0x2   :  { %2350 = sst [smem:[#allocation27_spill]] %s2333_s1 }
   0x3   :  { %2351 = sst [smem:[#allocation28_spill]] %s2334_s2 }
   0x4   :  { %2352 = sst [smem:[#allocation29_spill]] %s2335_s3 }
   0x5   :  { %2353 = sst [smem:[#allocation30_spill]] %s2340_s8 }
   0x6   :  { %14 = vsyncpa [#allocation5], 0 }
   0x7   :  { %15 = vsyncpa [#allocation7], 0 }
   0x8   :  { %16 = vsyncpa [#allocation3], 0 }
   0x9   :  { %18 = vsyncpa [#allocation3 + $0x1], 0 }
   0xa   :  { %19 = vsyncpa [#allocation11], 0 }
   0xb   :  { %21 = vsyncpa [#allocation11 + $0x1], 0 }
   0xc   :  { %22 = vsyncpa [#allocation4], 0 }
   0xd   :  { %24 = vsyncpa [#allocation4 + $0x1], 0  ;;  %s1958_s30 = smov 0   ;;  %s1960_s10 = smov 0  }
   0xe   :  { %s1962_s11 = smov 0   ;;  %s1964_s12 = smov 0  }
   0xf   :  { %s1966_s13 = smov 0   ;;  %s1968_s14 = smov 0  }
  0x10 LB: > { %2354 = sst [smem:[#allocation20_spill]] %s1875_s30  ;;  %s1989_s15 = sadd.s32 4294967295, %s1895_s14   ;;  %s1895_s14 = sphi %s1968_s14, %s30_s14   ;;  %s1891_s13 = sphi %s1966_s13, %s2378_s13   ;;  %s1887_s12 = sphi %s1964_s12, %s2377_s12   ;;  %s1883_s11 = sphi %s1962_s11, %s2376_s11   ;;  %s1879_s10 = sphi %s1960_s10, %s2380_s10   ;;  %s1875_s30 = sphi %s1958_s30, %s2379_s30  }
  0x11   : > { %2355 = sst [smem:[#allocation21_spill]] %s1883_s11  ;;  %s1440_s16 = sadd.s32 4294967294, %s1895_s14  }
  0x12   : > { %2356 = sst [smem:[#allocation22_spill]] %s1891_s13  ;;  %p125_p0 = scmp.ne.s32.totalorder %s1879_s10, %s1875_s30 }
  0x13   : > { %p126_p1 = scmp.eq.s32.totalorder %s1989_s15, 0  ;;  %p263_p2 = scmp.eq.s32.totalorder %s1989_s15, 1 }
  0x14   : > { %p269_p3 = scmp.eq.s32.totalorder %s1440_s16, 1  ;;  %p1441_p5 = scmp.ge.s32.totalorder %s1895_s14, 1 }
  0x15   : > { %p1998_p4 = por %p126_p1, %p125_p0  ;;  %p276_p7 = scmp.lt.s32.totalorder %s1895_s14, 3 }
  0x16   : > { %p2003_p6 = por %p269_p3, %p125_p0  ;;  %s2360_s1 = sld [smem:[#allocation27_spill]] }
  0x17   : > { %p2011_p8 = pnand %p1441_p5, %p276_p7  ;;  %p1446_p9 = scmp.ge.s32.totalorder %s1895_s14, 2 }
  0x18   : > { %s2358_s18 = scalar_select %p2003_p6, 1, 0 }
  0x19   : > { %p1568_p10 = pneg %p2011_p8  ;;  %s2362_s8 = sld [smem:[#allocation30_spill]] }
  0x1a   : > { %2359 = sst [smem:[#allocation23_spill]] %s2358_s18  ;;  %s1897_s27 = smov [#allocation12]  }
  0x1b   : > { %p2023_p11 = pnand %p1568_p10, %p126_p1  ;;  %s328_s28 = sshll.u32 %s1897_s27, 4  ;;  %s329_s28 = int_to_ptr.vmem [resolvable:$true] %s328_s28 }
  0x1c   : > { %s298_s21 = sshll.u32 %s2360_s1, 4  ;;  %s1898_s29 = smov [#allocation6]   ;;  %s299_s21 = int_to_ptr.hbm [resolvable:$true] %s298_s21 }
  0x1d   : > { %1574 = dma.hbm_to_smem (!%p2023_p11), %s299_s21, 16, %s1898_s29, [#allocation7]  }
  0x1e   : > { %s2342_s16 = smov 128   ;;  %s2343_s19 = smov 8  }
  0x1f   : > { %s326_s25 = sshll.u32 %s2362_s8, 4  ;;  %s2364_s0 = sld [smem:[#allocation26_spill]]  ;;  %s327_s25 = int_to_ptr.hbm [resolvable:$true] %s326_s25 }
  0x20   : > { %1580 = dma.hbm_to_vmem [thread:$0]  (!%p2023_p11), %s327_s25, 256, %s329_s28, [#allocation11], %s2342_s16, %s2342_s16, %s2343_s19  }
  0x21   : > { %s2365_s2 = sld [smem:[#allocation28_spill]]  ;;  %s1901_s29 = smov [#allocation2]  }
  0x22   : > { %s1902_s8 = smov [#allocation8]   ;;  %s42_s25 = sadd.s32 1, %s1891_s13 }
  0x23   : > { %s112_s28 = sadd.s32 1, %s1883_s11  ;;  %p44_p12 = scmp.ge.s32.totalorder %s42_s25, 2 }
  0x24   : > { %p119_p13 = scmp.ne.s32.totalorder %s1883_s11, %s1879_s10  ;;  %p120_p0 = scmp.eq.s32.totalorder %s1895_s14, 0 }
  0x25   : > { %s288_s24 = sshll.u32 %s2364_s0, 4  ;;  %p1596_p3 = scmp.lt.s32.totalorder %s1895_s14, 2  ;;  %s289_s24 = int_to_ptr.hbm [resolvable:$true] %s288_s24 }
  0x26   : > { %1571 = dma.hbm_to_smem (!%p2023_p11), %s289_s24, 16, %s1901_s29, [#allocation5]  }
  0x27   : > { %s308_s21 = sshll.u32 %s2365_s2, 4  ;;  %s2382_s25 = smov (%p44_p12, %s42_s25), 0  ;;  %s309_s21 = int_to_ptr.hbm [resolvable:$true] %s308_s21 }
  0x28   : > { %1577 = dma.hbm_to_smem (!%p2023_p11), %s309_s21, 16, %s1902_s8, [#allocation7]  }
  0x29   : > { %2366 = sst [smem:[#allocation24_spill]] %s2382_s25  ;;  %p2052_p5 = por %p120_p0, %p119_p13 }
  0x2a   : > { %p2058_p7 = por %p263_p2, %p119_p13  ;;  %s109_s8 = ssub.s32 %s1891_s13, %s2382_s25 }
  0x2b   : > { %s342_s20 = sand.u32 1, %s1883_s11   ;;  %p110_p10 = scmp.eq.s32.totalorder %s109_s8, 0 }
  0x2c   : > { %s1447_s23 = sshll.u32 %s342_s20, 4  ;;  %s1543_s24 = sshll.u32 %s1891_s13, 4 }
  0x2d   : > { %s2067_s27 = scalar_select %p110_p10, %s1883_s11, %s112_s28  }
  0x2e   : > { %s2370_s3 = sld [smem:[#allocation29_spill]]  ;;  %s346_s0 = scalar_lea.vmem [#allocation9], %s1447_s23 }
  0x2f   : > { %2369 = sst [smem:[#allocation25_spill]] %s2067_s27  ;;  %s354_s2 = sshll.u32 %s346_s0, 4  ;;  %s355_s2 = int_to_ptr.vmem [resolvable:$true] %s354_s2 }
  0x30   : > { %p1582_p2 = pnand %p1596_p3, %p2052_p5  ;;  %s374_s8 = scalar_lea.hbm %s2336_s4, %s1543_s24 }
  0x31   : > { %s343_s13 = scalar_lea.sflag [#allocation3], %s342_s20  ;;  %s1903_s28 = smov 64  }
  0x32   : > { %s1904_s27 = smov 4   ;;  %s375_s11 = sshll.u32 %s374_s8, 4  ;;  %s376_s11 = int_to_ptr.hbm [resolvable:$true] %s375_s11 }
  0x33   : > { %s368_s21 = scalar_lea.vmem [#allocation10], %s1447_s23  ;;  %s2372_s30 = smov 128  }
  0x34   : > { %s351_s16 = scalar_lea.hbm %s2370_s3, %s1543_s24  ;;  %s377_s29 = sshll.u32 %s368_s21, 4  ;;  %s378_s29 = int_to_ptr.vmem [resolvable:$true] %s377_s29 }
  0x35   : > { %s352_s19 = sshll.u32 %s351_s16, 4  ;;  %s364_s16 = sand.u32 1, %s1895_s14   ;;  %s353_s19 = int_to_ptr.hbm [resolvable:$true] %s352_s19 }
  0x36   : > { %1584 = dma.hbm_to_vmem [thread:$0]  (!%p1582_p2), %s353_s19, 256, %s355_s2, %s343_s13, %s1903_s28, %s1903_s28, %s1904_s27  }
  0x37   : > { %s365_s0 = scalar_lea.sflag [#allocation11], %s364_s16  ;;  %s2371_s3 = smov 8  }
  0x38   : > { %1587 = dma.hbm_to_vmem [thread:$0]  (!%p1582_p2), %s376_s11, 256, %s378_s29, %s365_s0, %s2372_s30, %s2372_s30, %s2371_s3  }
  0x39   : > { %389 = sbr.rel (%p2011_p8) target bundleno = 778 (0x30a), region = 56 }
  0x3e   : > { %1850 = dma.done.wait (%p126_p1), [#allocation5], 16  }
  0x3f   : > { %1852 = vsyncadd (%p126_p1), [#allocation5], 4294967280 }
  0x40   : > { %1854 = dma.done.wait (%p126_p1), [#allocation7], 32  }
  0x41   : > { %1856 = vsyncadd (%p126_p1), [#allocation7], 4294967264  ;;  %s2094_s2 = sand.u32 1, %s1879_s10  }
  0x42   : > { %s2097_s3 = sshll.u32 %s2094_s2, 4  ;;  %s407_s30 = scalar_lea.sflag [#allocation3], %s2094_s2 }
  0x43   : > { %s2101_s11 = scalar_lea.vmem [#allocation9], %s2097_s3 }
  0x44   : > { %1858 = dma.done.wait (%p1998_p4), %s407_s30, 256  }
  0x45   : > { %1860 = vsyncadd (%p1998_p4), %s407_s30, 4294967040  ;;  %s416_s13 = sand.u32 1, %s1989_s15   ;;  %s2109_s22 = scalar_lea.vmem [#allocation10], %s2097_s3 }
  0x46   : > { %s417_s18 = scalar_lea.sflag [#allocation11], %s416_s13 }
  0x47   : > { %1862 = dma.done.wait (%p1998_p4), %s417_s18, 256  }
  0x48   : > { %1864 = vsyncadd (%p1998_p4), %s417_s18, 4294967040 }
  0x49   : > { %1866 = dma.done.wait (%p126_p1), [#allocation11], 256  }
  0x4a   : > { %1868 = vsyncadd (%p126_p1), [#allocation11], 4294967040 }
  0x4b   : > { %431 = sfence }
  0x4c   : > { %s473_s19 = sld [smem:[#allocation2]]  ;;  %v514_v0 = vld [vmem:[%s2109_s22] sm:$0x1]  ;;  %v515_v1 = vld [vmem:[%s2109_s22 + $0x8] sm:$0x1]  ;;  %vm519_vm0 = vcmask 1041409  }
  0x4d   : > { %s474_s25 = sld [smem:[#allocation6]]  ;;  %v518_v2 = vrot.slane %v515_v1, 7  ;;  %vm525_vm1 = vcmask 1041408   ;;  %v2121_v3 = vld [vmem:[#allocation12 + $0x8] sm:$0xff]  ;;  %v2127_v4 = vld [vmem:[%s2338_s6] sm:$0x3] }
  0x4e   : > { %s475_s1 = sld [smem:[#allocation8]]  ;;  %566 = vmatpush.msra.mxu2 %v2121_v3  ;;  %vm521_vm2 = vcmask 15360   ;;  %vm490_vm3 = vcmask 1043456   ;;  %v2141_v16 = vld [vmem:[%s2337_s5] sm:$0x3]  ;;  %vm486_vm4 = vcmask 31744  }
  0x4f   : > { %s1468_s17 = sld [smem:[#allocation2 + $0x1]]  ;;  %v520_v5 = vsel %vm519_vm0, %v518_v2, %v514_v0  ;;  %v2151_v24 = vld [vmem:[#allocation12] sm:$0xff]  ;;  %v622_v26 = vld [vmem:[%s2109_s22 + $0x9] sm:$0x1]  ;;  %v1905_v37 = vmov 0   ;;  %vm548_vm5 = vcmask 130048  }
  0x50   : > { %s1469_s23 = sld [smem:[#allocation6 + $0x1]]  ;;  %1465 = vmatpush.msk.msra.mxu1 %vm525_vm1, %v520_v5  ;;  %567 = vmatpush.msra.mxu2 %v2151_v24  ;;  %v625_v27 = vrot.slane %v622_v26, 7  ;;  %v621_v28 = vld [vmem:[%s2109_s22 + $0x1] sm:$0x1]  ;;  %v715_v38 = vld [vmem:[%s2109_s22 + $0x2] sm:$0x1] }
  0x51   : > { %s1470_s24 = sld [smem:[#allocation8 + $0x1]]  ;;  %1466 = vmatmul.msk.f32.vlgmr.msra.gmra.mxu1 %vm521_vm2, %v2127_v4  ;;  %v469_v36 = vld [vmem:[%s2339_s7] sm:$0x3]  ;;  %1661 = vset.pattern.permute.xlu0 %v1905_v37  ;;  %v716_v39 = vld [vmem:[%s2109_s22 + $0xa] sm:$0x1]  ;;  %vm581_vm6 = vcmask 516096  }
  0x52   : > { %s1461_s27 = sshll.u32 %s473_s19, 2  ;;  %666 = vmatpush.msrb.mxu1 %v2121_v3  ;;  %s1478_s19 = sld [smem:[#allocation2 + $0x2]]  ;;  %v626_v29 = vsel %vm519_vm0, %v625_v27, %v621_v28  ;;  %574 = vperm.xlu0 %1661, %v469_v36   ;;  %v719_v40 = vrot.slane %v716_v39, 7  ;;  %v810_v49 = vld [vmem:[%s2109_s22 + $0xb] sm:$0x1] }
  0x53   : > { %s477_s8 = scalar_lea.vmem %s2101_s11, %s1461_s27 [#allocation9]  ;;  %s1462_s28 = sshll.u32 %s474_s25, 2  ;;  %v813_v51 = vrot.slane %v810_v49, 7  ;;  %v809_v52 = vld [vmem:[%s2109_s22 + $0x3] sm:$0x1]  ;;  %v998_v27 = vld [vmem:[%s2109_s22 + $0xd] sm:$0x1] }
  0x54   : > { %v478_v6 = vld [vmem:[%s477_s8] sm:$0xf]  ;;  %s480_s21 = scalar_lea.vmem %s2101_s11, %s1462_s28 [#allocation9]  ;;  %v483_v8 = vstv %s475_s1  ;;  %s1479_s25 = sld [smem:[#allocation6 + $0x2]]  ;;  %667 = vmatpush.msrb.mxu1 %v2151_v24  ;;  %v720_v41 = vsel %vm519_vm0, %v719_v40, %v715_v38 }
  0x55   : > { %v481_v7 = vld [vmem:[%s480_s21] sm:$0xf]  ;;  %s1471_s29 = sshll.u32 %s1468_s17, 2  ;;  %s1480_s1 = sld [smem:[#allocation8 + $0x2]]  ;;  %1485 = vmatpush.msk.msrb.mxu2 %vm525_vm1, %v720_v41  ;;  %v814_v54 = vsel %vm519_vm0, %v813_v51, %v809_v52 }
  0x56   : > { %v482_v9 = vsub.f32 %v481_v7, %v478_v6  ;;  %s589_s16 = scalar_lea.vmem %s2101_s11, %s1471_s29 [#allocation9]  ;;  %s1472_s0 = sshll.u32 %s1469_s23, 2 }
  0x57   : > { %v590_v10 = vld [vmem:[%s589_s16] sm:$0xf]  ;;  %s592_s30 = scalar_lea.vmem %s2101_s11, %s1472_s0 [#allocation9]  ;;  %v595_v13 = vstv %s1470_s24  ;;  %s1488_s24 = sld [smem:[#allocation2 + $0x3]] }
  0x58   : > { %v484_v11 = vmul.f32 %v483_v8, %v482_v9  ;;  %v593_v12 = vld [vmem:[%s592_s30] sm:$0xf]  ;;  %s1481_s17 = sshll.u32 %s1478_s19, 2  ;;  %s1489_s27 = sld [smem:[#allocation6 + $0x3]] }
  0x59   : > { %v594_v14 = vsub.f32 %v593_v12, %v590_v10  ;;  %s683_s20 = scalar_lea.vmem %s2101_s11, %s1481_s17 [#allocation9]  ;;  %s1490_s8 = sld [smem:[#allocation8 + $0x3]]  ;;  %v904_v12 = vld [vmem:[%s2109_s22 + $0xc] sm:$0x1] }
  0x5a   : > { %v485_v15 = vadd.f32 %v484_v11, %v478_v6  ;;  %s1482_s15 = sshll.u32 %s1479_s25, 2  ;;  %v684_v19 = vld [vmem:[%s683_s20] sm:$0xf]  ;;  %s1498_s13 = sld [smem:[#allocation2 + $0x4]]  ;;  %v903_v11 = vld [vmem:[%s2109_s22 + $0x4] sm:$0x1] }
  0x5b   : > { %v596_v17 = vmul.f32 %v595_v13, %v594_v14  ;;  %s686_s23 = scalar_lea.vmem %s2101_s11, %s1482_s15 [#allocation9]  ;;  %v689_v22 = vstv %s1480_s1  ;;  %s1499_s18 = sld [smem:[#allocation6 + $0x4]]  ;;  %v907_v13 = vrot.slane %v904_v12, 7 }
  0x5c   : > { %1463 = vmatpush.msk.msra.mxu0 %vm490_vm3, %v485_v15  ;;  %v687_v20 = vld [vmem:[%s686_s23] sm:$0xf]  ;;  %s1500_s19 = sld [smem:[#allocation8 + $0x4]] }
  0x5d   : > { %v597_v18 = vadd.f32 %v596_v17, %v590_v10  ;;  %1464 = vmatmul.msk.f32.vlgmr.msra.gmra.mxu0 %vm486_vm4, %v2141_v16  ;;  %v688_v21 = vsub.f32 %v687_v20, %v684_v19  ;;  %s1491_s28 = sshll.u32 %s1488_s24, 2  ;;  %s1508_s1 = sld [smem:[#allocation2 + $0x5]]  ;;  %v908_v14 = vsel %vm519_vm0, %v907_v13, %v903_v11 }
  0x5e   : > { %s1492_s21 = sshll.u32 %s1489_s27, 2  ;;  %s777_s29 = scalar_lea.vmem %s2101_s11, %s1491_s28 [#allocation9]  ;;  %1475 = vmatpush.msk.msrb.mxu0 %vm525_vm1, %v626_v29  ;;  %v1001_v29 = vrot.slane %v998_v27, 7 }
  0x5f   : > { %1473 = vmatpush.msk.msra.mxu3 %vm490_vm3, %v597_v18  ;;  %v690_v23 = vmul.f32 %v689_v22, %v688_v21  ;;  %s780_s16 = scalar_lea.vmem %s2101_s11, %s1492_s21 [#allocation9]  ;;  %v778_v30 = vld [vmem:[%s777_s29] sm:$0xf]  ;;  %v783_v32 = vstv %s1490_s8  ;;  %s1509_s15 = sld [smem:[#allocation6 + $0x5]] }
  0x60   : > { %1474 = vmatmul.msk.f32.vlgmr.msra.gmra.mxu3 %vm486_vm4, %v2141_v16  ;;  %v781_v31 = vld [vmem:[%s780_s16] sm:$0xf]  ;;  %760 = vmatpush.msra.mxu0 %v2121_v3  ;;  %s1501_s25 = sshll.u32 %s1498_s13, 2  ;;  %s1510_s24 = sld [smem:[#allocation8 + $0x5]] }
  0x61   : > { %v691_v25 = vadd.f32 %v690_v23, %v684_v19  ;;  %v782_v33 = vsub.f32 %v781_v31, %v778_v30  ;;  %s1502_s17 = sshll.u32 %s1499_s18, 2  ;;  %s871_s20 = scalar_lea.vmem %s2101_s11, %s1501_s25 [#allocation9] }
  0x62   : > { %761 = vmatpush.msra.mxu0 %v2151_v24  ;;  %s874_s23 = scalar_lea.vmem %s2101_s11, %s1502_s17 [#allocation9]  ;;  %v872_v45 = vld [vmem:[%s871_s20] sm:$0xf]  ;;  %v877_v48 = vstv %s1500_s19  ;;  %s2205_s29 = scalar_lea.vmem [#allocation13], %s2097_s3 }
  0x63   : > { %1483 = vmatpush.msk.msrb.mxu3 %vm490_vm3, %v691_v25  ;;  %v784_v34 = vmul.f32 %v783_v32, %v782_v33  ;;  %v875_v46 = vld [vmem:[%s874_s23] sm:$0xf]  ;;  %s1511_s27 = sshll.u32 %s1508_s1, 2  ;;  %s1518_s3 = sld [smem:[#allocation2 + $0x6]] }
  0x64   : > { %v876_v47 = vsub.f32 %v875_v46, %v872_v45  ;;  %s965_s28 = scalar_lea.vmem %s2101_s11, %s1511_s27 [#allocation9]  ;;  %s1519_s16 = sld [smem:[#allocation6 + $0x6]]  ;;  %v1092_v46 = vld [vmem:[%s2109_s22 + $0xe] sm:$0x1] }
  0x65   : > { %1476 = vmatmul.msk.f32.vlgmr.msrb.gmra.mxu0 %vm521_vm2, %v2127_v4  ;;  %v785_v35 = vadd.f32 %v784_v34, %v778_v30  ;;  %s1512_s8 = sshll.u32 %s1509_s15, 2  ;;  %1495 = vmatpush.msk.msra.mxu3 %vm525_vm1, %v814_v54  ;;  %v966_v55 = vld [vmem:[%s965_s28] sm:$0xf]  ;;  %s1520_s0 = sld [smem:[#allocation8 + $0x6]]  ;;  %v997_v30 = vld [vmem:[%s2109_s22 + $0x5] sm:$0x1] }
  0x66   : > { %v878_v50 = vmul.f32 %v877_v48, %v876_v47  ;;  %s968_s21 = scalar_lea.vmem %s2101_s11, %s1512_s8 [#allocation9]  ;;  %v971_v57 = vstv %s1510_s24  ;;  %s1528_s13 = sld [smem:[#allocation2 + $0x7]]  ;;  %v1002_v32 = vsel %vm519_vm0, %v1001_v29, %v997_v30  ;;  %v1095_v47 = vrot.slane %v1092_v46, 7 }
  0x67   : > { %1493 = vmatpush.msk.msra.mxu1 %vm490_vm3, %v785_v35  ;;  %v969_v56 = vld [vmem:[%s968_s21] sm:$0xf]  ;;  %s1529_s19 = sld [smem:[#allocation6 + $0x7]]  ;;  %s1256_s28 = sshll.u32 %s2205_s29, 4  ;;  %s1257_s28 = int_to_ptr.vmem [resolvable:$true] %s1256_s28 }
  0x68   : > { %1484 = vmatmul.msk.f32.vlgmr.msrb.gmra.mxu3 %vm486_vm4, %v2141_v16  ;;  %v879_v53 = vadd.f32 %v878_v50, %v872_v45  ;;  %v970_v58 = vsub.f32 %v969_v56, %v966_v55  ;;  %s1530_s17 = sld [smem:[#allocation8 + $0x7]]  ;;  %v1091_v45 = vld [vmem:[%s2109_s22 + $0x6] sm:$0x1] }
  0x69   : > { %948 = vmatpush.msrb.mxu3 %v2121_v3  ;;  %s1521_s30 = sshll.u32 %s1518_s3, 2  ;;  %v1096_v48 = vsel %vm519_vm0, %v1095_v47, %v1091_v45 }
  0x6a   : > { %1503 = vmatpush.msk.msrb.mxu0 %vm490_vm3, %v879_v53  ;;  %v972_v59 = vmul.f32 %v971_v57, %v970_v58  ;;  %s1522_s18 = sshll.u32 %s1519_s16, 2  ;;  %s1059_s25 = scalar_lea.vmem %s2101_s11, %s1521_s30 [#allocation9]  ;;  %v1186_v53 = vld [vmem:[%s2109_s22 + $0xf] sm:$0x1] }
  0x6b   : > { %949 = vmatpush.msrb.mxu3 %v2151_v24  ;;  %s1062_s1 = scalar_lea.vmem %s2101_s11, %s1522_s18 [#allocation9]  ;;  %v1060_v22 = vld [vmem:[%s1059_s25] sm:$0xf]  ;;  %v1065_v26 = vstv %s1520_s0  ;;  %v1189_v54 = vrot.slane %v1186_v53, 7 }
  0x6c   : > { %v973_v60 = vadd.f32 %v972_v59, %v966_v55  ;;  %v1063_v23 = vld [vmem:[%s1062_s1] sm:$0xf]  ;;  %s1531_s15 = sshll.u32 %s1528_s13, 2  ;;  %v1185_v55 = vld [vmem:[%s2109_s22 + $0x7] sm:$0x1]  ;;  %s1817_s13 = scalar_lea.hbm %s2341_s9, 32 }
  0x6d   : > { %v1064_v25 = vsub.f32 %v1063_v23, %v1060_v22  ;;  %s1532_s20 = sshll.u32 %s1529_s19, 2  ;;  %s1153_s23 = scalar_lea.vmem %s2101_s11, %s1531_s15 [#allocation9] }
  0x6e   : > { %s1156_s24 = scalar_lea.vmem %s2101_s11, %s1532_s20 [#allocation9]  ;;  %v1154_v33 = vld [vmem:[%s1153_s23] sm:$0xf]  ;;  %v1159_v35 = vstv %s1530_s17  ;;  %s1545_s11 = sshll.u32 %s1887_s12, 4 }
  0x6f   : > { %v1066_v28 = vmul.f32 %v1065_v26, %v1064_v25  ;;  %v1157_v34 = vld [vmem:[%s1156_s24] sm:$0xf]  ;;  %s1255_s8 = scalar_lea.hbm %s2341_s9, %s1545_s11  ;;  %s1243_s12 = scalar_lea.sflag [#allocation4], %s2094_s2 }
  0x70   : > { %1496 = vmatmul.msk.f32.vlgmr.msra.gmra.mxu3 %vm521_vm2, %v2127_v4  ;;  %v1158_v36 = vsub.f32 %v1157_v34, %v1154_v33  ;;  %s1258_s21 = sshll.u32 %s1255_s8, 4  ;;  %s1259_s21 = int_to_ptr.hbm [resolvable:$true] %s1258_s21 }
  0x71   : > { %v1067_v31 = vadd.f32 %v1066_v28, %v1060_v22  ;;  %s1811_s3 = sshra.s32 %s1259_s21, 4  ;;  %s1812_s3 = int_to_ptr.hbm [resolvable:$true] %s1811_s3 }
  0x72   : > { %v1160_v37 = vmul.f32 %v1159_v35, %v1158_v36  ;;  %s1813_s16 = scalar_lea.hbm %s1812_s3, 16  ;;  %p1818_p11 = scmp.lt.s32.totalorder %s1812_s3, %s2341_s9 }
  0x73   : > { %1523 = vmatpush.msk.msra.mxu3 %vm490_vm3, %v1067_v31  ;;  %p1814_p1 = scmp.ne.s32.totalorder %s1812_s3, %s1813_s16  ;;  %p1819_p12 = scmp.lt.s32.totalorder %s1817_s13, %s1813_s16 }
  0x74   : > { %v1161_v38 = vadd.f32 %v1160_v37, %v1154_v33 }
  0x75   : > { %p1815_p4 = pnand %p1814_p1, %p2058_p7  ;;  %p1820_p13 = por %p1819_p12, %p1818_p11 }
  0x77   : > { %p1816_p8 = pneg %p1815_p4 }
  0x79   : > { %p1821_p0 = pnand %p1820_p13, %p1816_p8 }
  0xc4   : > { %v2201_v63 = vpop.permute.xlu0 %574 }
  0xce   : > { %v545_v61 = vpop.f32.mrf.mxu1 }
  0xda   : > { %v511_v42 = vpop.f32.mrf.mxu0 }
  0xdb   : > { %1467 = vmatmul.msk.f32.vlgmr.msra.gmra.mxu2 %vm548_vm5, %v511_v42 }
  0xdc   : > { %854 = vmatpush.msra.mxu2 %v2121_v3 }
  0xde   : > { %855 = vmatpush.msra.mxu2 %v2151_v24 }
  0xe2   : > { %v646_v1 = vpop.f32.mrf.mxu0 }
  0xe3   : > { %v618_v43 = vpop.f32.mrf.mxu3  ;;  %1486 = vmatmul.msk.f32.vlgmr.msrb.gmra.mxu2 %vm521_vm2, %v2127_v4 }
  0xe4   : > { %1477 = vmatmul.msk.f32.vlgmr.msrb.gmra.mxu1 %vm548_vm5, %v618_v43  ;;  %1513 = vmatpush.msk.msrb.mxu2 %vm490_vm3, %v973_v60 }
  0xe5   : > { %1505 = vmatpush.msk.msrb.mxu1 %vm525_vm1, %v908_v14 }
  0xeb   : > { %v712_v44 = vpop.f32.mrf.mxu3 }
  0xec   : > { %1494 = vmatmul.msk.f32.vlgmr.msra.gmra.mxu1 %vm486_vm4, %v2141_v16  ;;  %1487 = vmatmul.msk.f32.vlgmr.msra.gmra.mxu0 %vm548_vm5, %v712_v44 }
  0xed   : > { %1042 = vmatpush.msra.mxu1 %v2121_v3  ;;  %1515 = vmatpush.msk.msra.mxu0 %vm525_vm1, %v1002_v32 }
  0xef   : > { %1043 = vmatpush.msra.mxu1 %v2151_v24 }
  0xf3   : > { %v834_v39 = vpop.f32.mrf.mxu3 }
  0xf4   : > { %1504 = vmatmul.msk.f32.vlgmr.msrb.gmra.mxu0 %vm486_vm4, %v2141_v16  ;;  %1506 = vmatmul.msk.f32.vlgmr.msrb.gmra.mxu1 %vm521_vm2, %v2127_v4 }
  0xf5   : > { %1136 = vmatpush.msrb.mxu0 %v2121_v3  ;;  %1533 = vmatpush.msk.msrb.mxu1 %vm490_vm3, %v1161_v38 }
  0xf7   : > { %1137 = vmatpush.msrb.mxu0 %v2151_v24 }
  0xfc   : > { %1516 = vmatmul.msk.f32.vlgmr.msra.gmra.mxu0 %vm521_vm2, %v2127_v4 }
 0x15e   : > { %v569_v62 = vpop.f32.mrf.mxu2 }
 0x15f   : > { %v570_v0 = vadd.f32 %v569_v62, %v545_v61 }
 0x161   : > { %v669_v2 = vpop.f32.mrf.mxu1  ;;  %v577_v5 = vadd.f32 %v2201_v63, %v570_v0 }
 0x162   : > { %v670_v6 = vadd.f32 %v669_v2, %v646_v1 }
 0x163   : > { %v579_v7 = vrot.slane %v577_v5, 1  ;;  %582 = vst.msk [vmem:[%s2205_s29] sm:$0x1] %vm581_vm6, %v577_v5 }
 0x164   : > { %v672_v8 = vadd.f32 %v670_v6, %v2201_v63 }
 0x165   : > { %583 = vst.msk [vmem:[%s2205_s29 + $0x8] sm:$0x1] %vm581_vm6, %v579_v7 }
 0x166   : > { %v674_v9 = vrot.slane %v672_v8, 1  ;;  %676 = vst.msk [vmem:[%s2205_s29 + $0x1] sm:$0x1] %vm581_vm6, %v672_v8  ;;  %v740_v15 = vpop.f32.mrf.mxu2 }
 0x168   : > { %677 = vst.msk [vmem:[%s2205_s29 + $0x9] sm:$0x1] %vm581_vm6, %v674_v9 }
 0x169   : > { %v806_v10 = vpop.f32.mrf.mxu1  ;;  %v763_v17 = vpop.f32.mrf.mxu0 }
 0x16a   : > { %1497 = vmatmul.msk.f32.vlgmr.msra.gmra.mxu2 %vm548_vm5, %v806_v10  ;;  %v764_v18 = vadd.f32 %v763_v17, %v740_v15 }
 0x16b   : > { %1525 = vmatpush.msk.msra.mxu2 %vm525_vm1, %v1096_v48 }
 0x16c   : > { %v766_v19 = vadd.f32 %v764_v18, %v2201_v63 }
 0x16e   : > { %v768_v20 = vrot.slane %v766_v19, 1  ;;  %770 = vst.msk [vmem:[%s2205_s29 + $0x2] sm:$0x1] %vm581_vm6, %v766_v19 }
 0x170   : > { %771 = vst.msk [vmem:[%s2205_s29 + $0xa] sm:$0x1] %vm581_vm6, %v768_v20 }
 0x171   : > { %v900_v21 = vpop.f32.mrf.mxu0  ;;  %v928_v49 = vpop.f32.mrf.mxu1 }
 0x172   : > { %1514 = vmatmul.msk.f32.vlgmr.msrb.gmra.mxu2 %vm486_vm4, %v2141_v16  ;;  %1507 = vmatmul.msk.f32.vlgmr.msrb.gmra.mxu3 %vm548_vm5, %v900_v21 }
 0x173   : > { %1230 = vmatpush.msrb.mxu2 %v2121_v3  ;;  %v1190_v3 = vsel %vm519_vm0, %v1189_v54, %v1185_v55 }
 0x174   : > { %1535 = vmatpush.msk.msrb.mxu3 %vm525_vm1, %v1190_v3 }
 0x175   : > { %1231 = vmatpush.msrb.mxu2 %v2151_v24 }
 0x179   : > { %v1022_v24 = vpop.f32.mrf.mxu0 }
 0x17a   : > { %1524 = vmatmul.msk.f32.vlgmr.msra.gmra.mxu3 %vm486_vm4, %v2141_v16  ;;  %1526 = vmatmul.msk.f32.vlgmr.msra.gmra.mxu2 %vm521_vm2, %v2127_v4 }
 0x182   : > { %1536 = vmatmul.msk.f32.vlgmr.msrb.gmra.mxu3 %vm521_vm2, %v2127_v4 }
 0x1ed   : > { %v857_v40 = vpop.f32.mrf.mxu2 }
 0x1ee   : > { %v858_v41 = vadd.f32 %v857_v40, %v834_v39 }
 0x1f0   : > { %v860_v42 = vadd.f32 %v858_v41, %v2201_v63 }
 0x1f2   : > { %v862_v43 = vrot.slane %v860_v42, 1  ;;  %864 = vst.msk [vmem:[%s2205_s29 + $0x3] sm:$0x1] %vm581_vm6, %v860_v42 }
 0x1f4   : > { %865 = vst.msk [vmem:[%s2205_s29 + $0xb] sm:$0x1] %vm581_vm6, %v862_v43 }
 0x1f5   : > { %v994_v44 = vpop.f32.mrf.mxu2  ;;  %v951_v50 = vpop.f32.mrf.mxu3 }
 0x1f6   : > { %1517 = vmatmul.msk.f32.vlgmr.msra.gmra.mxu1 %vm548_vm5, %v994_v44  ;;  %v952_v51 = vadd.f32 %v951_v50, %v928_v49 }
 0x1fd   : > { %v1088_v56 = vpop.f32.mrf.mxu3  ;;  %v1116_v62 = vpop.f32.mrf.mxu2 }
 0x1fe   : > { %1534 = vmatmul.msk.f32.vlgmr.msrb.gmra.mxu1 %vm486_vm4, %v2141_v16  ;;  %v954_v16 = vadd.f32 %v952_v51, %v2201_v63  ;;  %1527 = vmatmul.msk.f32.vlgmr.msrb.gmra.mxu0 %vm548_vm5, %v1088_v56 }
 0x200   : > { %v956_v52 = vrot.slane %v954_v16, 1  ;;  %958 = vst.msk [vmem:[%s2205_s29 + $0x4] sm:$0x1] %vm581_vm6, %v954_v16 }
 0x202   : > { %959 = vst.msk [vmem:[%s2205_s29 + $0xc] sm:$0x1] %vm581_vm6, %v956_v52 }
 0x205   : > { %v1210_v5 = vpop.f32.mrf.mxu3 }
 0x273   : > { %v1045_v57 = vpop.f32.mrf.mxu1 }
 0x274   : > { %v1046_v58 = vadd.f32 %v1045_v57, %v1022_v24 }
 0x276   : > { %v1048_v59 = vadd.f32 %v1046_v58, %v2201_v63 }
 0x278   : > { %v1050_v60 = vrot.slane %v1048_v59, 1  ;;  %1052 = vst.msk [vmem:[%s2205_s29 + $0x5] sm:$0x1] %vm581_vm6, %v1048_v59 }
 0x27a   : > { %1053 = vst.msk [vmem:[%s2205_s29 + $0xd] sm:$0x1] %vm581_vm6, %v1050_v60 }
 0x27b   : > { %v1182_v61 = vpop.f32.mrf.mxu1  ;;  %v1139_v0 = vpop.f32.mrf.mxu0 }
 0x27c   : > { %1537 = vmatmul.msk.f32.vlgmr.msrb.gmra.mxu2 %vm548_vm5, %v1182_v61  ;;  %v1140_v1 = vadd.f32 %v1139_v0, %v1116_v62 }
 0x27e   : > { %v1142_v4 = vadd.f32 %v1140_v1, %v2201_v63 }
 0x280   : > { %v1144_v2 = vrot.slane %v1142_v4, 1  ;;  %1146 = vst.msk [vmem:[%s2205_s29 + $0x6] sm:$0x1] %vm581_vm6, %v1142_v4 }
 0x282   : > { %1147 = vst.msk [vmem:[%s2205_s29 + $0xe] sm:$0x1] %vm581_vm6, %v1144_v2 }
 0x2ff   : > { %v1233_v6 = vpop.f32.mrf.mxu2 }
 0x300   : > { %v1234_v7 = vadd.f32 %v1233_v6, %v1210_v5 }
 0x302   : > { %v1236_v8 = vadd.f32 %v1234_v7, %v2201_v63 }
 0x304   : > { %v1238_v9 = vrot.slane %v1236_v8, 1  ;;  %1240 = vst.msk [vmem:[%s2205_s29 + $0x7] sm:$0x1] %vm581_vm6, %v1236_v8 }
 0x306   : > { %1241 = vst.msk [vmem:[%s2205_s29 + $0xf] sm:$0x1] %vm581_vm6, %v1238_v9 }
 0x307   : > { %1824 = shalt.err (!%p1821_p0)
}
 0x308   : > { %s1906_s2 = smov 128   ;;  %s1907_s29 = smov 8  }
 0x309   : > { %1566 = dma.vmem_to_hbm [thread:$0]  (%p2058_p7), %s1257_s28, 256, %s1259_s21, %s1243_s12, %s1906_s2, %s1906_s2, %s1907_s29  }
 0x30a PF: > { %s2373_s25 = sld [smem:[#allocation20_spill]]  ;;  %p1589_p3 = pnand %p1446_p9, %p2003_p6 }
 0x30c   : > { %p1590_p5 = pneg %p1589_p3 }
 0x310   : > { %s1273_s17 = sand.u32 1, %s2373_s25  }
 0x311   : > { %s1274_s15 = scalar_lea.sflag [#allocation4], %s1273_s17 }
 0x312   : > { %1870 = dma.done.wait (%p1590_p5), %s1274_s15, 256  }
 0x313   : > { %1872 = vsyncadd (%p1590_p5), %s1274_s15, 4294967040  ;;  %s30_s14 = sadd.s32 1, %s1895_s14   ;;  %s2375_s20 = sld [smem:[#allocation21_spill]] }
 0x314   : > { %p27_p10 = scmp.ge.s32.totalorder %s30_s14, 4   ;;  %s2376_s11 = sld [smem:[#allocation25_spill]] }
 0x315   : > { %s2377_s12 = sld [smem:[#allocation22_spill]]  ;;  %s2379_s30 = smov %s1879_s10 }
 0x316   : > { %s2378_s13 = sld [smem:[#allocation24_spill]]  ;;  %29 = sbr.rel (!%p27_p10) target bundleno = 16 (0x10), region = 147 }
 0x319   : > { %s2380_s10 = smov %s2375_s20 }
 0x31b   :  { %1280 = vsyncpa [#allocation3], 1 }
 0x31c   :  { %1282 = vsyncpa [#allocation3 + $0x1], 1 }
 0x31d   :  { %1283 = vsyncpa [#allocation11], 1 }
 0x31e   :  { %1285 = vsyncpa [#allocation11 + $0x1], 1 }
 0x31f   :  { %1286 = vsyncpa [#allocation4], 1 }
 0x320   :  { %1288 = vsyncpa [#allocation4 + $0x1], 1 }
 0x321   :  { %1289 = vsyncpa [#allocation5], 1 }
 0x322   :  { %1291 = vsyncpa [#allocation5 + $0x1], 1 }
 0x323   :  { %1292 = vsyncpa [#allocation7], 1 }

</bundles_post_ra>
